<compile_context>
chip_gen: v5e
topology: v5e:2x2
jax: 0.10.0
libtpu: 0.0.40
codegen_flags: <defaults>
</compile_context>

<pallas_src>
import functools
import math

import jax
import jax.numpy as jnp
from jax.experimental import pallas as pl
from jax.experimental.pallas import tpu as pltpu


def attention_pool_kernel(x_ref, q_ref, len_ref, o_ref, *, scaled, input_dim):
    """One grid step pools a (TB, S, D) slab of the batch.

    x_ref:   (TB, S, D) VMEM, native dtype
    q_ref:   (1, D)     VMEM (shared across grid steps)
    len_ref: (TB, 1)    VMEM int32
    o_ref:   (TB, D)    VMEM output
    """
    tb, s, d = x_ref.shape

    # f32 working copy of the slab (a no-op for f32 inputs; for bf16 inputs
    # this doubles the working-set footprint, which the wrapper accounts for
    # by sizing tb in f32-equivalent bytes — relevant on v5e with no bf16 VALU).
    xf = x_ref[...].astype(jnp.float32)                       # (TB, S, D)

    # Fold the 1/sqrt(D) scale into the (small) query vector once per step.
    qf = q_ref[...].astype(jnp.float32)                       # (1, D)
    if scaled:
        qf = qf * jnp.float32(1.0 / math.sqrt(input_dim))

    # scores[b, k] = <x[b, k, :], q>  — VPU multiply + lane (D) reduction, f32.
    scores = jnp.sum(xf * qf.reshape(1, 1, d), axis=-1)       # (TB, S)

    # Mask positions >= length (lengths arrive as a (TB, 1) VMEM block).
    pos = jax.lax.broadcasted_iota(jnp.int32, (tb, s), 1)
    scores = jnp.where(pos < len_ref[...], scores, -jnp.inf)

    # Softmax over the sequence axis, f32 intermediates.  All-masked rows
    # (length == 0) yield NaN, matching torch.softmax on a row of -inf.
    m = jnp.max(scores, axis=1, keepdims=True)                # (TB, 1)
    e = jnp.exp(scores - m)                                   # (TB, S)
    denom = jnp.sum(e, axis=1, keepdims=True)                 # (TB, 1)

    # pooled[b, :] = sum_k e[b, k] * x[b, k, :]  — VPU multiply + sublane (S)
    # reduction with f32 accumulation; 1/denom applied once per row (EUP).
    pooled = jnp.sum(xf * e[:, :, None], axis=1)              # (TB, D)
    pooled = pooled * pl.reciprocal(denom, approx=True)
    o_ref[...] = pooled.astype(o_ref.dtype)


def _choose_block_batch(batch, seq_len, dim, target_f32_bytes=8 * 1024 * 1024):
    """Pick the batch tile size.

    * Sized so one slab's f32 working set is ~8 MiB: amortizes the ~0.35 us
      per-grid-step overhead even at v7x's 3.2 TB/s, and using f32-equivalent
      bytes bounds the in-kernel f32 upcast for bf16 inputs.
    * Capped so there are >= 4 grid steps when the batch allows it, i.e. at
      least 2 steps per TensorCore on v7x so double-buffering overlaps.
    * Rounded down to a multiple of 8 with a floor of 8: tb is the
      second-to-last dim of the output / lengths BlockSpecs, so it must
      satisfy the (8, 128) rule for arbitrary shapes.
    """
    per_row = max(1, seq_len * dim * 4)
    tb = max(1, target_f32_bytes // per_row)
    tb = min(int(tb), max(1, batch // 4))
    tb = max(8, (tb // 8) * 8)
    return int(tb)


def attention_pool(x, lengths, query, *, scaled=True, block_batch=None):
    """x: (B, S, D) float, lengths: (B,) int, query: (D,) float -> (B, D)."""
    B, S, D = x.shape
    lengths = lengths.astype(jnp.int32).reshape(B, 1)
    q2 = query.astype(x.dtype).reshape(1, D)

    tb = block_batch if block_batch is not None else _choose_block_batch(B, S, D)
    tb = max(8, (int(tb) // 8) * 8)            # sublane-aligned batch tile
    grid_b = int(pl.cdiv(B, tb))
    b_pad = grid_b * tb
    if b_pad != B:
        x = jnp.pad(x, ((0, b_pad - B), (0, 0), (0, 0)))
        # Pad lengths with 1 so padded rows avoid the all-masked NaN path.
        lengths = jnp.pad(lengths, ((0, b_pad - B), (0, 0)), constant_values=1)

    # Scoped-VMEM budget derived from the tile: double-buffered native slab +
    # f32 working copies (upcast + product temporaries) + slack.  Capped at
    # 48 MiB to leave headroom under v7x's 64 MiB physical VMEM per core.
    native_block = tb * S * D * x.dtype.itemsize
    f32_block = tb * S * D * 4
    vmem_limit = 2 * native_block + 3 * f32_block + 2 * 1024 * 1024
    vmem_limit = int(min(max(vmem_limit, 16 * 1024 * 1024), 48 * 1024 * 1024))

    kernel = functools.partial(attention_pool_kernel,
                               scaled=scaled, input_dim=D)

    out = pl.pallas_call(
        kernel,
        out_shape=jax.ShapeDtypeStruct((b_pad, D), x.dtype),
        grid=(grid_b,),
        in_specs=[
            pl.BlockSpec((tb, S, D), lambda b: (b, 0, 0)),   # x slab
            pl.BlockSpec((1, D), lambda b: (0, 0)),          # query (shared)
            pl.BlockSpec((tb, 1), lambda b: (b, 0)),         # lengths block
        ],
        out_specs=pl.BlockSpec((tb, D), lambda b: (b, 0)),
        compiler_params=pltpu.CompilerParams(
            dimension_semantics=("parallel",),
            vmem_limit_bytes=vmem_limit,
        ),
    )(x, q2, lengths)
    return out[:B]


def attention_pool_ref(x, lengths, query, *, scaled=True):
    """Pure-JAX reference for validation."""
    B, S, D = x.shape
    xf = x.astype(jnp.float32)
    scores = jnp.einsum("bsd,d->bs", xf, query.astype(jnp.float32))
    if scaled:
        scores = scores / math.sqrt(D)
    mask = jnp.arange(S)[None, :] < lengths[:, None]
    scores = jnp.where(mask, scores, -jnp.inf)
    alpha = jax.nn.softmax(scores, axis=1)
    return jnp.sum(xf * alpha[..., None], axis=1).astype(x.dtype)


# TODO(synk): the rest of BeeTLeNet (embedding lookup, packed BiLSTM,
# lstm_to_transformer Linear, nn.TransformerEncoder stack, classifier head)
# is not implemented here; this kernel covers the AttentionPool stage.

if __name__ == "__main__":
    key = jax.random.PRNGKey(0)
    k_x, k_q = jax.random.split(key)

    # Small shapes consistent with the module: (batch, seq_len, transformer_dim)
    B, S, D = 16, 16, 128
    x = jax.random.normal(k_x, (B, S, D), dtype=jnp.float32)
    # Deterministic "randn" query parameter (module __init__: torch.randn(input_dim))
    query = jax.random.normal(k_q, (D,), dtype=jnp.float32)
    lengths = jnp.array([16, 12, 9, 5, 16, 1, 7, 3, 10, 16, 2, 14, 6, 11, 8, 4],
                        dtype=jnp.int32)

    out = attention_pool(x, lengths, query, scaled=True)
    out = jax.block_until_ready(out)

    ref = attention_pool_ref(x, lengths, query, scaled=True)
    assert out.shape == (B, D)
    # f32 accumulation throughout; residual error comes from the EUP approx
    # reciprocal in the softmax normalization (~1e-3 relative).
    assert jnp.allclose(out, ref, atol=1e-2, rtol=1e-2), "mismatch vs reference"

    print("KERNEL_OK")
</pallas_src>

<mosaic_0001>
module attributes {stable_mosaic.version = 11 : i64} {
  func.func @attention_pool_kernel(%arg0: i32, %arg1: memref<8x16x128xf32, #tpu.memory_space<vmem>>, %arg2: memref<1x128xf32, #tpu.memory_space<vmem>>, %arg3: memref<8x1xi32, #tpu.memory_space<vmem>>, %arg4: memref<8x128xf32, #tpu.memory_space<vmem>>) attributes {dimension_semantics = [#tpu.dimension_semantics<parallel>], iteration_bounds = array<i64: 2>, scalar_prefetch = 0 : i64, scratch_operands = 0 : i64, tpu.core_type = #tpu.core_type<tc>, window_params = [{transform_indices = @transform_0, window_bounds = array<i64: 8, 16, 128>}, {pipeline_mode = #tpu.pipeline_mode<synchronous>, transform_indices = @transform_1, window_bounds = array<i64: 1, 128>}, {transform_indices = @transform_2, window_bounds = array<i64: 8, 1>}, {transform_indices = @transform_3, window_bounds = array<i64: 8, 128>}]} {
    %c0 = arith.constant 0 : index
    %c0_0 = arith.constant 0 : index
    %c0_1 = arith.constant 0 : index
    %0 = vector.load %arg1[%c0, %c0_0, %c0_1] : memref<8x16x128xf32, #tpu.memory_space<vmem>>, vector<8x16x128xf32>
    %c0_2 = arith.constant 0 : index
    %c0_3 = arith.constant 0 : index
    %1 = vector.load %arg2[%c0_2, %c0_3] : memref<1x128xf32, #tpu.memory_space<vmem>>, vector<1x128xf32>
    %cst = arith.constant 0.0883883461 : f32
    %2 = vector.broadcast %cst : f32 to vector<1x128xf32>
    %3 = arith.mulf %1, %2 : vector<1x128xf32>
    %4 = vector.shape_cast %3 : vector<1x128xf32> to vector<1x1x128xf32>
    %5 = vector.broadcast %4 : vector<1x1x128xf32> to vector<8x16x128xf32>
    %6 = arith.mulf %0, %5 : vector<8x16x128xf32>
    %cst_4 = arith.constant dense<0.000000e+00> : vector<8x16xf32>
    %7 = vector.multi_reduction <add>, %6, %cst_4 [2] : vector<8x16x128xf32> to vector<8x16xf32>
    %8 = tpu.iota {dimensions = array<i32: 1>} : vector<8x16xi32>
    %c0_5 = arith.constant 0 : index
    %c0_6 = arith.constant 0 : index
    %9 = vector.load %arg3[%c0_5, %c0_6] : memref<8x1xi32, #tpu.memory_space<vmem>>, vector<8x1xi32>
    %10 = vector.broadcast %9 : vector<8x1xi32> to vector<8x16xi32>
    %11 = arith.cmpi slt, %8, %10 : vector<8x16xi32>
    %cst_7 = arith.constant 0xFF800000 : f32
    %12 = vector.broadcast %cst_7 : f32 to vector<8x16xf32>
    %13 = arith.select %11, %7, %12 : vector<8x16xi1>, vector<8x16xf32>
    %cst_8 = arith.constant dense<0xFF800000> : vector<8xf32>
    %14 = vector.multi_reduction <maximumf>, %13, %cst_8 [1] : vector<8x16xf32> to vector<8xf32>
    %15 = vector.shape_cast %14 : vector<8xf32> to vector<8x1xf32>
    %16 = vector.broadcast %15 : vector<8x1xf32> to vector<8x16xf32>
    %17 = arith.subf %13, %16 : vector<8x16xf32>
    %18 = math.exp %17 : vector<8x16xf32>
    %cst_9 = arith.constant dense<0.000000e+00> : vector<8xf32>
    %19 = vector.multi_reduction <add>, %18, %cst_9 [1] : vector<8x16xf32> to vector<8xf32>
    %20 = vector.shape_cast %19 : vector<8xf32> to vector<8x1xf32>
    %21 = vector.shape_cast %18 : vector<8x16xf32> to vector<8x16x1xf32>
    %22 = vector.broadcast %21 : vector<8x16x1xf32> to vector<8x16x128xf32>
    %23 = arith.mulf %0, %22 : vector<8x16x128xf32>
    %cst_10 = arith.constant dense<0.000000e+00> : vector<8x128xf32>
    %24 = vector.multi_reduction <add>, %23, %cst_10 [1] : vector<8x16x128xf32> to vector<8x128xf32>
    %25 = tpu.reciprocal %20 {approx = true} : vector<8x1xf32> -> vector<8x1xf32>
    %26 = vector.broadcast %25 : vector<8x1xf32> to vector<8x128xf32>
    %27 = arith.mulf %24, %26 : vector<8x128xf32>
    %c0_11 = arith.constant 0 : index
    %c0_12 = arith.constant 0 : index
    %28 = vector.load %arg4[%c0_11, %c0_12] : memref<8x128xf32, #tpu.memory_space<vmem>>, vector<8x128xf32>
    tpu.vector_store %arg4[%c0_11, %c0_12], %27 {strides = array<i32>} : memref<8x128xf32, #tpu.memory_space<vmem>>, vector<8x128xf32>,
    return
  }
  func.func @transform_0(%arg0: i32) -> (i32, i32, i32) {
    %c0_i32 = arith.constant 0 : i32
    %c0_i32_0 = arith.constant 0 : i32
    %c0_i32_1 = arith.constant 0 : i32
    return %arg0, %c0_i32, %c0_i32_0 : i32, i32, i32
  }
  func.func @transform_1(%arg0: i32) -> (i32, i32) {
    %c0_i32 = arith.constant 0 : i32
    %c0_i32_0 = arith.constant 0 : i32
    %c0_i32_1 = arith.constant 0 : i32
    return %c0_i32, %c0_i32_0 : i32, i32
  }
  func.func @transform_2(%arg0: i32) -> (i32, i32) {
    %c0_i32 = arith.constant 0 : i32
    %c0_i32_0 = arith.constant 0 : i32
    return %arg0, %c0_i32 : i32, i32
  }
  func.func @transform_3(%arg0: i32) -> (i32, i32) {
    %c0_i32 = arith.constant 0 : i32
    %c0_i32_0 = arith.constant 0 : i32
    return %arg0, %c0_i32 : i32, i32
  }
}

</mosaic_0001>

<bundles_post_ra>
// kernel: tpu_custom_call.1
= control target key start
LH: loop header
LB: loop body
LE: loop exit
PB: predicated region body
PF: predicated region fallthrough
CT: control target
= control target key end

     0   :  { %8 = vsyncpa [#allocation3], 0  ;;  %s1121_s0 = inlined_call_operand.hbm [shape: f32[16,16,128], index: 0, kind: input, shape index: {}]   ;;  %s1122_s1 = inlined_call_operand.vmem [shape: f32[1,128], index: 1, kind: input, shape index: {}]   ;;  %s1123_s2 = inlined_call_operand.vmem [shape: s32[16,1], index: 2, kind: input, shape index: {}]   ;;  %s1124_s3 = inlined_call_operand.hbm [shape: f32[16,128], index: 3, kind: output, shape index: {}]  }
   0x1   :  { %10 = vsyncpa [#allocation3 + $0x1], 0 }
   0x2   :  { %11 = vsyncpa [#allocation4], 0 }
   0x3   :  { %13 = vsyncpa [#allocation4 + $0x1], 0  ;;  %s879_s12 = smov 0   ;;  %s881_s13 = smov 0  }
   0x4   :  { %s883_s14 = smov 0   ;;  %s885_s15 = smov 0  }
   0x5 LB: > { %s900_s16 = sadd.s32 4294967295, %s854_s15   ;;  %s677_s17 = sadd.s32 4294967294, %s854_s15   ;;  %s854_s15 = sphi %s885_s15, %s1134_s15   ;;  %s850_s14 = sphi %s883_s14, %s1133_s14   ;;  %s846_s13 = sphi %s881_s13, %s1132_s13   ;;  %s842_s12 = sphi %s879_s12, %s1131_s12  }
   0x6   : > { %s904_s18 = sadd.s32 1, %s854_s15   ;;  %s26_s19 = sadd.s32 1, %s850_s14 }
   0x7   : > { %s23_s20 = ssub.s32 %s854_s15, %s904_s18  ;;  %p33_p0 = scmp.ne.s32.totalorder %s850_s14, %s846_s13 }
   0x8   : > { %p24_p1 = scmp.eq.s32.totalorder %s23_s20, 0  ;;  %p34_p2 = scmp.eq.s32.totalorder %s854_s15, 0 }
   0x9   : > { %p39_p3 = scmp.ne.s32.totalorder %s846_s13, %s842_s12  ;;  %p40_p4 = scmp.eq.s32.totalorder %s900_s16, 0 }
   0xa   : > { %s916_s21 = scalar_select %p24_p1, %s850_s14, %s26_s19  }
   0xb   : > { %p918_p5 = por %p34_p2, %p33_p0  ;;  %p922_p6 = por %p40_p4, %p39_p3 }
   0xc   : > { %p110_p7 = scmp.eq.s32.totalorder %s900_s16, 1  ;;  %p116_p8 = scmp.eq.s32.totalorder %s677_s17, 1 }
   0xd   : > { %p706_p10 = scmp.lt.s32.totalorder %s854_s15, 2  ;;  %s139_s26 = sand.u32 1, %s850_s14  }
   0xe   : > { %p929_p11 = por %p110_p7, %p33_p0  ;;  %p933_p12 = por %p116_p8, %p39_p3 }
   0xf   : > { %s693_s27 = sshll.u32 %s854_s15, 7  ;;  %s680_s28 = sshll.u32 %s139_s26, 7 }
  0x10   : > { %s149_s4 = scalar_lea.hbm %s1121_s0, %s693_s27  ;;  %s143_s6 = scalar_lea.vmem [#allocation2], %s680_s28 }
  0x11   : > { %s150_s5 = sshll.u32 %s149_s4, 4  ;;  %s152_s7 = sshll.u32 %s143_s6, 4  ;;  %s151_s5 = int_to_ptr.hbm [resolvable:$true] %s150_s5  ;;  %s153_s7 = int_to_ptr.vmem [resolvable:$true] %s152_s7 }
  0x12   : > { %p944_p13 = pnand %p706_p10, %p918_p5  ;;  %p684_p0 = scmp.ge.s32.totalorder %s854_s15, 1 }
  0x13   : > { %p167_p1 = scmp.lt.s32.totalorder %s854_s15, 3  ;;  %s140_s9 = scalar_lea.sflag [#allocation3], %s139_s26 }
  0x14   : > { %s758_s10 = sshra.s32 %s151_s5, 4  ;;  %p762_p3 = pneg %p944_p13  ;;  %s759_s10 = int_to_ptr.hbm [resolvable:$true] %s758_s10 }
  0x15   : > { %s760_s11 = scalar_lea.hbm %s759_s10, 128  ;;  %s765_s20 = scalar_lea.hbm %s1121_s0, 256 }
  0x16   : > { %p761_p2 = scmp.ne.s32.totalorder %s759_s10, %s760_s11  ;;  %p766_p5 = scmp.lt.s32.totalorder %s759_s10, %s1121_s0 }
  0x17   : > { %p767_p8 = scmp.lt.s32.totalorder %s765_s20, %s760_s11 }
  0x18   : > { %p763_p4 = pnand %p762_p3, %p761_p2 }
  0x19   : > { %p768_p10 = por %p767_p8, %p766_p5 }
  0x1a   : > { %p764_p7 = pneg %p763_p4 }
  0x1c   : > { %p769_p9 = pnand %p768_p10, %p764_p7 }
  0x1e   : > { %772 = shalt.err (!%p769_p9)
}
  0x1f   : > { %s856_s26 = smov 128   ;;  %s857_s28 = smov 8  }
  0x20   : > { %701 = dma.hbm_to_vmem [thread:$0]  (!%p944_p13), %s151_s5, 2048, %s153_s7, %s140_s9, %s856_s26, %s856_s26, %s857_s28  }
  0x21   : > { %p168_p2 = pnand %p684_p0, %p167_p1 }
  0x22   : > { %s965_s29 = sand.u32 (!%p168_p2), 1, %s846_s13  }
  0x23   : > { %171 = sbr.rel (%p168_p2) target bundleno = 547 (0x223), region = 32  ;;  %s685_s30 = sshll.u32 (!%p168_p2), %s965_s29, 7 }
  0x24   : > { %s174_s4 = scalar_lea.sflag (!%p168_p2), [#allocation3], %s965_s29  ;;  %s969_s6 = scalar_lea.vmem (!%p168_p2), [#allocation2], %s685_s30 }
  0x28   : > { %833 = dma.done.wait (%p922_p6), %s174_s4, 2048  }
  0x29   : > { %835 = vsyncadd (%p922_p6), %s174_s4, 4294965248  ;;  %v226_v0 = vld [vmem:[%s1122_s1] sm:$0x1]  ;;  %v982_v3 = vld [vmem:[%s969_s6 + $0x10] sm:$0xff]  ;;  %v858_v18 = vmov 0   ;;  %p206_p6 = scmp.lt.s32.totalorder %s900_s16, 1  ;;  %v279_v47 = vlaneseq }
  0x2a   : > { %v227_v1 = vmul.f32 0.088388346, %v226_v0  ;;  %v979_v2 = vld [vmem:[%s969_s6 + $0x20] sm:$0xff]  ;;  %v991_v9 = vld [vmem:[%s969_s6 + $0x28] sm:$0xff]  ;;  %v994_v10 = vld [vmem:[%s969_s6 + $0x18] sm:$0xff]  ;;  %743 = vset.pattern.permute.xlu1 %v858_v18  ;;  %vm305_vm0 = vcmask 130112  }
  0x2b   : > { %v985_v4 = vld [vmem:[%s969_s6] sm:$0xff]  ;;  %v997_v11 = vld [vmem:[%s969_s6 + $0x8] sm:$0xff]  ;;  %v1006_v16 = vld [vmem:[%s969_s6 + $0x38] sm:$0xff]  ;;  %s207_s23 = scalar_select %p206_p6, %s900_s16, 1  ;;  %v280_v48 = vand.u32 127, %v279_v47  ;;  %vm328_vm1 = vcmask 1041409  }
  0x2c   : > { %v229_v5 = vperm.slane %v227_v1, 0  ;;  %v1003_v15 = vld [vmem:[%s969_s6 + $0x40] sm:$0xff]  ;;  %v1009_v17 = vld [vmem:[%s969_s6 + $0x30] sm:$0xff]  ;;  %v1015_v22 = vld [vmem:[%s969_s6 + $0x58] sm:$0xff]  ;;  %vm330_vm2 = vcmask 1042434   ;;  %vm332_vm3 = vcmask 1043459  }
  0x2d   : > { %v1018_v23 = vld [vmem:[%s969_s6 + $0x50] sm:$0xff]  ;;  %v1021_v24 = vld [vmem:[%s969_s6 + $0x48] sm:$0xff]  ;;  %v1033_v30 = vld [vmem:[%s969_s6 + $0x60] sm:$0xff]  ;;  %s687_s8 = sshll.u32 %s207_s23, 3  ;;  %v303_v49 = vadd.s32 4294967288, %v280_v48  ;;  %vm334_vm4 = vcmask 1044484  }
  0x2e   : > { %v235_v6 = vmul.f32 %v229_v5, %v979_v2  ;;  %v233_v7 = vmul.f32 %v229_v5, %v982_v3  ;;  %v231_v8 = vmul.f32 %v229_v5, %v985_v4  ;;  %v236_v12 = vmul.f32 %v229_v5, %v991_v9  ;;  %v1027_v28 = vld [vmem:[%s969_s6 + $0x68] sm:$0xff]  ;;  %v1030_v29 = vld [vmem:[%s969_s6 + $0x70] sm:$0xff]  ;;  %v1039_v34 = vld [vmem:[%s969_s6 + $0x78] sm:$0xff]  ;;  %s209_s11 = scalar_lea.vmem %s1123_s2, %s687_s8  ;;  %s686_s17 = sshll.u32 %s965_s29, 3 }
  0x2f   : > { %v234_v13 = vmul.f32 %v229_v5, %v994_v10  ;;  %v232_v14 = vmul.f32 %v229_v5, %v997_v11  ;;  %v239_v19 = vmul.f32 %v229_v5, %v1003_v15  ;;  %v238_v20 = vmul.f32 %v229_v5, %v1006_v16  ;;  %v281_v36 = vld [vmem:[%s209_s11] sm:$0xff]  ;;  %s689_s19 = sshll.u32 %s900_s16, 3  ;;  %s204_s16 = scalar_lea.vmem [#allocation5], %s686_s17 }
  0x30   : > { %255 = vadd.xlane.f32.xlu2 %v235_v6  ;;  %251 = vadd.xlane.f32.xlu1 %v233_v7  ;;  %v237_v21 = vmul.f32 %v229_v5, %v1009_v17  ;;  %v242_v25 = vmul.f32 %v229_v5, %v1015_v22  ;;  %v241_v26 = vmul.f32 %v229_v5, %v1018_v23  ;;  %vm336_vm5 = vcmask 1045509   ;;  %s590_s27 = scalar_lea.hbm %s1124_s3, %s689_s19  ;;  %s592_s26 = sshll.u32 %s204_s16, 4  ;;  %s593_s26 = int_to_ptr.vmem [resolvable:$true] %s592_s26 }
  0x31   : > { %247 = vadd.xlane.f32.xlu0 %v231_v8  ;;  %v240_v27 = vmul.f32 %v229_v5, %v1021_v24  ;;  %v244_v31 = vmul.f32 %v229_v5, %v1027_v28  ;;  %v245_v32 = vmul.f32 %v229_v5, %v1030_v29  ;;  %v243_v33 = vmul.f32 %v229_v5, %v1033_v30  ;;  %s594_s28 = sshll.u32 %s590_s27, 4  ;;  %s580_s30 = scalar_lea.sflag [#allocation4], %s965_s29  ;;  %s595_s28 = int_to_ptr.hbm [resolvable:$true] %s594_s28 }
  0x32   : > { %v246_v35 = vmul.f32 %v229_v5, %v1039_v34  ;;  %vm338_vm6 = vcmask 1046534   ;;  %vm340_vm7 = vcmask 1047559   ;;  %vm344_vm8 = vcmask 130048   ;;  %s802_s4 = sshra.s32 %s595_s28, 4  ;;  %s808_s23 = scalar_lea.hbm %s1124_s3, 16  ;;  %s803_s4 = int_to_ptr.hbm [resolvable:$true] %s802_s4 }
  0x33   : > { %s804_s6 = scalar_lea.hbm %s803_s4, 8  ;;  %p809_p1 = scmp.lt.s32.totalorder %s803_s4, %s1124_s3 }
  0x34   : > { %p805_p9 = scmp.ne.s32.totalorder %s803_s4, %s804_s6  ;;  %p810_p3 = scmp.lt.s32.totalorder %s808_s23, %s804_s6 }
  0x36   : > { %p806_p13 = pnand %p805_p9, %p929_p11  ;;  %p811_p4 = por %p810_p3, %p809_p1 }
  0x38   : > { %257 = vadd.xlane.f32.xlu2 %v236_v12  ;;  %253 = vadd.xlane.f32.xlu1 %v234_v13  ;;  %p807_p0 = pneg %p806_p13 }
  0x39   : > { %249 = vadd.xlane.f32.xlu0 %v232_v14 }
  0x3a   : > { %p812_p7 = pnand %p811_p4, %p807_p0 }
  0x40   : > { %263 = vadd.xlane.f32.xlu2 %v239_v19  ;;  %261 = vadd.xlane.f32.xlu1 %v238_v20 }
  0x41   : > { %259 = vadd.xlane.f32.xlu0 %v237_v21 }
  0x48   : > { %269 = vadd.xlane.f32.xlu2 %v242_v25  ;;  %267 = vadd.xlane.f32.xlu1 %v241_v26 }
  0x49   : > { %265 = vadd.xlane.f32.xlu0 %v240_v27 }
  0x50   : > { %273 = vadd.xlane.f32.xlu1 %v244_v31  ;;  %275 = vadd.xlane.f32.xlu2 %v245_v32 }
  0x51   : > { %271 = vadd.xlane.f32.xlu0 %v243_v33 }
  0x59   : > { %277 = vadd.xlane.f32.xlu0 %v246_v35 }
  0x69   : > { %283 = vperm.xlu1 %743, %v281_v36  }
  0xa3   : > { %v252_v38 = vpop.xlane.xlu1 %251  ;;  %v256_v39 = vpop.xlane.xlu2 %255 }
  0xa4   : > { %v248_v37 = vpop.xlane.xlu0 %247  ;;  %v307_v56 = vperm.slane %v252_v38, %v280_v48  ;;  %v310_v57 = vperm.slane %v256_v39, %v280_v48 }
  0xa5   : > { %v302_v53 = vperm.slane %v248_v37, %v280_v48 }
  0xab   : > { %v254_v41 = vpop.xlane.xlu1 %253  ;;  %v258_v43 = vpop.xlane.xlu2 %257 }
  0xac   : > { %v250_v40 = vpop.xlane.xlu0 %249  ;;  %v308_v54 = vperm.slane %v254_v41, %v303_v49  ;;  %v311_v58 = vperm.slane %v258_v43, %v303_v49 }
  0xad   : > { %v304_v55 = vperm.slane %v250_v40, %v303_v49 }
  0xae   : > { %v309_v59 = vsel %vm305_vm0, %v308_v54, %v307_v56  ;;  %v312_v5 = vsel %vm305_vm0, %v311_v58, %v310_v57 }
  0xaf   : > { %v306_v60 = vsel %vm305_vm0, %v304_v55, %v302_v53 }
  0xb0   : > { %v329_v6 = vsel %vm328_vm1, %v309_v59, %v306_v60 }
  0xb1   : > { %v331_v21 = vsel %vm330_vm2, %v312_v5, %v329_v6 }
  0xb3   : > { %v262_v44 = vpop.xlane.xlu1 %261  ;;  %v264_v46 = vpop.xlane.xlu2 %263 }
  0xb4   : > { %v260_v42 = vpop.xlane.xlu0 %259  ;;  %v314_v61 = vperm.slane %v262_v44, %v303_v49  ;;  %v316_v63 = vperm.slane %v264_v46, %v280_v48 }
  0xb5   : > { %v313_v62 = vperm.slane %v260_v42, %v280_v48  ;;  %v356_v42 = vshrl.u32 %v279_v47, 7 }
  0xb7   : > { %v315_v12 = vsel %vm305_vm0, %v314_v61, %v313_v62  ;;  %744 = vset.pattern.permute.xlu2 %v356_v42  ;;  %746 = vset.pattern.permute.xlu1 %v356_v42  ;;  %v363_v43 = vadd.s32 8, %v356_v42 }
  0xb8   : > { %v333_v27 = vsel %vm332_vm3, %v315_v12, %v331_v21 }
  0xb9   : > { %745 = vset.pattern.permute.xlu0 %v363_v43 }
  0xbb   : > { %v268_v50 = vpop.xlane.xlu1 %267  ;;  %v270_v52 = vpop.xlane.xlu2 %269 }
  0xbc   : > { %v266_v45 = vpop.xlane.xlu0 %265  ;;  %v320_v13 = vperm.slane %v270_v52, %v303_v49  ;;  %v319_v14 = vperm.slane %v268_v50, %v280_v48 }
  0xbd   : > { %v317_v0 = vperm.slane %v266_v45, %v303_v49 }
  0xbe   : > { %v321_v31 = vsel %vm305_vm0, %v320_v13, %v319_v14 }
  0xbf   : > { %v318_v18 = vsel %vm305_vm0, %v317_v0, %v316_v63 }
  0xc0   : > { %v335_v32 = vsel %vm334_vm4, %v318_v18, %v333_v27 }
  0xc1   : > { %v337_v36 = vsel %vm336_vm5, %v321_v31, %v335_v32 }
  0xc3   : > { %v274_v1 = vpop.xlane.xlu1 %273  ;;  %v276_v7 = vpop.xlane.xlu2 %275 }
  0xc4   : > { %v272_v51 = vpop.xlane.xlu0 %271  ;;  %v323_v19 = vperm.slane %v274_v1, %v303_v49  ;;  %v325_v25 = vperm.slane %v276_v7, %v280_v48 }
  0xc5   : > { %v322_v20 = vperm.slane %v272_v51, %v280_v48 }
  0xc7   : > { %v324_v33 = vsel %vm305_vm0, %v323_v19, %v322_v20 }
  0xc8   : > { %v339_v38 = vsel %vm338_vm6, %v324_v33, %v337_v36 }
  0xcc   : > { %v278_v8 = vpop.xlane.xlu0 %277 }
  0xcd   : > { %v326_v26 = vperm.slane %v278_v8, %v303_v49 }
  0xcf   : > { %v327_v35 = vsel %vm305_vm0, %v326_v26, %v325_v25 }
  0xd0   : > { %v341_v39 = vsel %vm340_vm7, %v327_v35, %v339_v38 }
  0xdb   : > { %v284_v37 = vpop.permute.xlu1 %283 }
  0xdc   : > { %vm285_vm9 = vcmp.lt.s32.totalorder %v280_v48, %v284_v37 }
  0xdd   : > { %v343_v40 = vsel %vm285_vm9, %v341_v39, -inf }
  0xde   : > { %v345_v41 = vsel %vm344_vm8, %v343_v40, -inf }
  0xdf   : > { %346 = vmax.xlane.f32.xlu2 %v345_v41 }
 0x152   : > { %v347_v44 = vpop.xlane.xlu2 %346 }
 0x153   : > { %v348_v45 = vsub.f32 %v343_v40, %v347_v44 }
 0x155   : > { %v349_v46 = vmul.f32 1.442695, %v348_v45 }
 0x157   : > { %754 = vpow2.f32 %v349_v46 }
 0x15d   : > { %v755_v49 = vpop.eup %754 }
 0x15e   : > { %v351_v50 = vsel %vm344_vm8, %v755_v49, 0.0  ;;  %v367_v51 = vperm.slane %v755_v49, 1  ;;  %v354_v48 = vperm.slane %v755_v49, 0  ;;  %v380_v52 = vperm.slane %v755_v49, 2 }
 0x15f   : > { %352 = vadd.xlane.f32.xlu0 %v351_v50  ;;  %v393_v47 = vperm.slane %v755_v49, 3  ;;  %v406_v53 = vperm.slane %v755_v49, 4  ;;  %v419_v54 = vperm.slane %v755_v49, 5  ;;  %v432_v55 = vperm.slane %v755_v49, 6 }
 0x160   : > { %372 = vperm.xlu1 %746, %v367_v51   ;;  %359 = vperm.xlu2 %744, %v354_v48   ;;  %v445_v56 = vperm.slane %v755_v49, 7 }
 0x168   : > { %385 = vperm.xlu1 %746, %v380_v52   ;;  %747 = vset.pattern.permute.xlu2 %v363_v43 }
 0x170   : > { %398 = vperm.xlu1 %746, %v393_v47   ;;  %378 = vperm.xlu2 %747, %v367_v51  }
 0x173   : > { %365 = vperm.xlu0 %745, %v354_v48  }
 0x178   : > { %411 = vperm.xlu1 %746, %v406_v53   ;;  %391 = vperm.xlu2 %747, %v380_v52  }
 0x17b   : > { %417 = vperm.xlu0 %745, %v406_v53  }
 0x180   : > { %749 = vset.pattern.permute.xlu1 %v363_v43  ;;  %404 = vperm.xlu2 %747, %v393_v47  }
 0x183   : > { %750 = vset.pattern.permute.xlu0 %v356_v42 }
 0x188   : > { %430 = vperm.xlu1 %749, %v419_v54   ;;  %748 = vset.pattern.permute.xlu2 %v356_v42 }
 0x18b   : > { %437 = vperm.xlu0 %750, %v432_v55  }
 0x190   : > { %752 = vset.pattern.permute.xlu1 %v356_v42  ;;  %424 = vperm.xlu2 %748, %v419_v54  }
 0x193   : > { %753 = vset.pattern.permute.xlu0 %v363_v43 }
 0x198   : > { %450 = vperm.xlu1 %752, %v445_v56   ;;  %751 = vset.pattern.permute.xlu2 %v363_v43 }
 0x1a0   : > { %443 = vperm.xlu2 %751, %v432_v55  }
 0x1a8   : > { %456 = vperm.xlu2 %751, %v445_v56  }
 0x1ba   : > { %v360_v57 = vpop.permute.xlu2 %359 }
 0x1bb   : > { %v458_v14 = vmul.f32 %v360_v57, %v985_v4 }
 0x1ca   : > { %v379_v59 = vpop.permute.xlu2 %378 }
 0x1cb   : > { %v461_v6 = vmul.f32 %v379_v59, %v994_v10 }
 0x1d2   : > { %v373_v58 = vpop.permute.xlu1 %372  ;;  %v353_v61 = vpop.xlane.xlu0 %352 }
 0x1d3   : > { %v392_v62 = vpop.permute.xlu2 %391  ;;  %v460_v5 = vmul.f32 %v373_v58, %v982_v3  ;;  %756 = vrcp.f32 %v353_v61 }
 0x1d4   : > { %v463_v20 = vmul.f32 %v392_v62, %v991_v9 }
 0x1d5   : > { %v481_v18 = vadd.f32 %v461_v6, %v460_v5 }
 0x1d7   : > { %v482_v27 = vrot.slane %v481_v18, 4 }
 0x1d9   : > { %v483_v35 = vadd.f32 %v482_v27, %v481_v18  ;;  %v757_v58 = vpop.eup %756 }
 0x1da   : > { %v386_v60 = vpop.permute.xlu1 %385 }
 0x1db   : > { %v405_v1 = vpop.permute.xlu2 %404  ;;  %v462_v12 = vmul.f32 %v386_v60, %v979_v2  ;;  %v484_v42 = vrot.slane %v483_v35, 2 }
 0x1dd   : > { %v488_v3 = vadd.f32 %v463_v20, %v462_v12  ;;  %v485_v51 = vadd.f32 %v484_v42, %v483_v35 }
 0x1df   : > { %v489_v33 = vrot.slane %v488_v3, 4  ;;  %v486_v56 = vrot.slane %v485_v51, 1 }
 0x1e1   : > { %v487_v5 = vadd.f32 %v486_v56, %v485_v51 }
 0x1e2   : > { %v399_v0 = vpop.permute.xlu1 %398 }
 0x1e3   : > { %v464_v25 = vmul.f32 %v399_v0, %v1009_v17 }
 0x1e5   : > { %v366_v63 = vpop.permute.xlu0 %365 }
 0x1e6   : > { %v459_v7 = vmul.f32 %v366_v63, %v997_v11  ;;  %v465_v11 = vmul.f32 %v405_v1, %v1006_v16 }
 0x1e8   : > { %v474_v26 = vadd.f32 %v459_v7, %v458_v14  ;;  %v495_v2 = vadd.f32 %v465_v11, %v464_v25  ;;  %v532_v7 = vrot.slane %v757_v58, 1 }
 0x1ea   : > { %v412_v13 = vpop.permute.xlu1 %411  ;;  %v425_v19 = vpop.permute.xlu2 %424  ;;  %v475_v32 = vrot.slane %v474_v26, 4  ;;  %v496_v17 = vrot.slane %v495_v2, 4 }
 0x1eb   : > { %v466_v10 = vmul.f32 %v412_v13, %v1003_v15  ;;  %v468_v36 = vmul.f32 %v425_v19, %v1018_v23  ;;  %v490_v15 = vadd.f32 %v489_v33, %v488_v3 }
 0x1ec   : > { %v476_v38 = vadd.f32 %v475_v32, %v474_v26  ;;  %v497_v46 = vadd.f32 %v496_v17, %v495_v2  ;;  %v533_v26 = vrot.slane %v757_v58, 2  ;;  %v534_v32 = vrot.slane %v757_v58, 3 }
 0x1ed   : > { %v418_v8 = vpop.permute.xlu0 %417  ;;  %v491_v50 = vrot.slane %v490_v15, 2 }
 0x1ee   : > { %v467_v21 = vmul.f32 %v418_v8, %v1021_v24  ;;  %v477_v49 = vrot.slane %v476_v38, 2  ;;  %v498_v47 = vrot.slane %v497_v46, 2 }
 0x1ef   : > { %v492_v55 = vadd.f32 %v491_v50, %v490_v15 }
 0x1f0   : > { %v502_v31 = vadd.f32 %v467_v21, %v466_v10  ;;  %v478_v53 = vadd.f32 %v477_v49, %v476_v38  ;;  %v499_v59 = vadd.f32 %v498_v47, %v497_v46  ;;  %v548_v21 = vmul.f32 %v532_v7, %v487_v5 }
 0x1f1   : > { %v493_v63 = vrot.slane %v492_v55, 1 }
 0x1f2   : > { %v503_v37 = vrot.slane %v502_v31, 4  ;;  %v479_v60 = vrot.slane %v478_v53, 1  ;;  %v500_v12 = vrot.slane %v499_v59, 1  ;;  %v563_v33 = vrot.slane %v548_v21, 7 }
 0x1f3   : > { %v494_v19 = vadd.f32 %v493_v63, %v492_v55 }
 0x1f4   : > { %v504_v44 = vadd.f32 %v503_v37, %v502_v31  ;;  %v480_v13 = vadd.f32 %v479_v60, %v478_v53  ;;  %v501_v10 = vadd.f32 %v500_v12, %v499_v59 }
 0x1f5   : > { %v549_v31 = vmul.f32 %v533_v26, %v494_v19 }
 0x1f6   : > { %v505_v48 = vrot.slane %v504_v44, 2  ;;  %v547_v27 = vmul.f32 %v757_v58, %v480_v13 }
 0x1f8   : > { %v564_v37 = vsel %vm328_vm1, %v563_v33, %v547_v27 }
 0x1fa   : > { %v431_v4 = vpop.permute.xlu1 %430  ;;  %v444_v24 = vpop.permute.xlu2 %443 }
 0x1fb   : > { %v469_v9 = vmul.f32 %v431_v4, %v1015_v22  ;;  %v471_v41 = vmul.f32 %v444_v24, %v1027_v28  ;;  %v536_v4 = vrot.slane %v757_v58, 5  ;;  %v550_v24 = vmul.f32 %v534_v32, %v501_v10 }
 0x1fd   : > { %v509_v39 = vadd.f32 %v469_v9, %v468_v36  ;;  %v438_v40 = vpop.permute.xlu0 %437  ;;  %v537_v9 = vrot.slane %v757_v58, 6  ;;  %v567_v42 = vrot.slane %v550_v24, 5 }
 0x1fe   : > { %v470_v16 = vmul.f32 %v438_v40, %v1033_v30  ;;  %v506_v30 = vadd.f32 %v505_v48, %v504_v44 }
 0x1ff   : > { %v510_v43 = vrot.slane %v509_v39, 4 }
 0x200   : > { %v516_v45 = vadd.f32 %v471_v41, %v470_v16  ;;  %v507_v8 = vrot.slane %v506_v30, 1 }
 0x201   : > { %v511_v23 = vadd.f32 %v510_v43, %v509_v39  ;;  %v565_v39 = vrot.slane %v549_v31, 6 }
 0x202   : > { %v517_v22 = vrot.slane %v516_v45, 4  ;;  %v457_v57 = vpop.permute.xlu2 %456  ;;  %v508_v3 = vadd.f32 %v507_v8, %v506_v30 }
 0x203   : > { %v512_v54 = vrot.slane %v511_v23, 2  ;;  %v473_v61 = vmul.f32 %v457_v57, %v1039_v34  ;;  %v566_v41 = vsel %vm330_vm2, %v565_v39, %v564_v37 }
 0x204   : > { %v518_v52 = vadd.f32 %v517_v22, %v516_v45  ;;  %v538_v45 = vrot.slane %v757_v58, 7 }
 0x205   : > { %v513_v62 = vadd.f32 %v512_v54, %v511_v23  ;;  %v568_v23 = vsel %vm332_vm3, %v567_v42, %v566_v41 }
 0x206   : > { %v519_v28 = vrot.slane %v518_v52, 2 }
 0x207   : > { %v514_v14 = vrot.slane %v513_v62, 1 }
 0x208   : > { %v520_v0 = vadd.f32 %v519_v28, %v518_v52 }
 0x209   : > { %v515_v11 = vadd.f32 %v514_v14, %v513_v62 }
 0x20a   : > { %v451_v1 = vpop.permute.xlu1 %450  ;;  %v521_v20 = vrot.slane %v520_v0, 1 }
 0x20b   : > { %v472_v6 = vmul.f32 %v451_v1, %v1030_v29  ;;  %v535_v29 = vrot.slane %v757_v58, 4  ;;  %v552_v17 = vmul.f32 %v536_v4, %v515_v11 }
 0x20c   : > { %v522_v2 = vadd.f32 %v521_v20, %v520_v0 }
 0x20d   : > { %v523_v18 = vadd.f32 %v473_v61, %v472_v6  ;;  %v551_v36 = vmul.f32 %v535_v29, %v508_v3  ;;  %v571_v43 = vrot.slane %v552_v17, 3 }
 0x20e   : > { %v553_v40 = vmul.f32 %v537_v9, %v522_v2 }
 0x20f   : > { %v524_v25 = vrot.slane %v523_v18, 4  ;;  %v569_v16 = vrot.slane %v551_v36, 4 }
 0x210   : > { %v573_v46 = vrot.slane %v553_v40, 2 }
 0x211   : > { %v525_v34 = vadd.f32 %v524_v25, %v523_v18  ;;  %v570_v50 = vsel %vm334_vm4, %v569_v16, %v568_v23 }
 0x212   : > { %v572_v51 = vsel %vm336_vm5, %v571_v43, %v570_v50 }
 0x213   : > { %v526_v35 = vrot.slane %v525_v34, 2  ;;  %v574_v48 = vsel %vm338_vm6, %v573_v46, %v572_v51 }
 0x215   : > { %v527_v38 = vadd.f32 %v526_v35, %v525_v34 }
 0x217   : > { %v528_v15 = vrot.slane %v527_v38, 1 }
 0x219   : > { %v529_v44 = vadd.f32 %v528_v15, %v527_v38 }
 0x21b   : > { %v554_v49 = vmul.f32 %v538_v45, %v529_v44 }
 0x21d   : > { %v575_v22 = vrot.slane %v554_v49, 1 }
 0x21f   : > { %v576_v52 = vsel %vm340_vm7, %v575_v22, %v574_v48 }
 0x220   : > { %578 = vst [vmem:[%s204_s16] sm:$0xff] %v576_v52 }
 0x221   : > { %815 = shalt.err (!%p812_p7)
}
 0x222   : > { %696 = dma.vmem_to_hbm [thread:$0]  (%p929_p11), %s593_s26, 128, %s595_s28, %s580_s30  }
 0x223 PF: > { %s606_s29 = sand.u32 1, %s842_s12   ;;  %p1130_p5 = scmp.ge.s32.totalorder %s854_s15, 2 }
 0x224   : > { %s607_s10 = scalar_lea.sflag [#allocation4], %s606_s29 }
 0x225   : > { %p703_p8 = pnand %p1130_p5, %p933_p12 }
 0x227   : > { %p704_p10 = pneg %p703_p8 }
 0x229   : > { %837 = dma.done.wait (%p704_p10), %s607_s10, 128  }
 0x22a   : > { %839 = vsyncadd (%p704_p10), %s607_s10, 4294967168  ;;  %p16_p2 = scmp.ge.s32.totalorder %s904_s18, 4   ;;  %s1131_s12 = smov %s846_s13 }
 0x22b   : > { %s1132_s13 = smov %s850_s14  ;;  %s1133_s14 = smov %s916_s21 }
 0x22c   : > { %s1134_s15 = smov %s904_s18  ;;  %18 = sbr.rel (!%p16_p2) target bundleno = 5 (0x5), region = 80 }
 0x231   :  { %613 = vsyncpa [#allocation3], 1 }
 0x232   :  { %615 = vsyncpa [#allocation3 + $0x1], 1 }
 0x233   :  { %616 = vsyncpa [#allocation4], 1 }
 0x234   :  { %618 = vsyncpa [#allocation4 + $0x1], 1 }

</bundles_post_ra>
